<compile_context>
chip_gen: v5e
topology: v5e:2x2
jax: 0.10.0
libtpu: 0.0.40
codegen_flags: <defaults>
</compile_context>

<pallas_src>
from functools import partial

import jax
import jax.numpy as jnp
from jax import lax
from jax.experimental import pallas as pl
from jax.experimental.pallas import tpu as pltpu


def _contrastive_loss_kernel(o1_ref, o2_ref, label_ref, out_ref, *,
                             margin, batch, tb):
    i = pl.program_id(0)

    o1 = o1_ref[...].astype(jnp.float32)        # (tb, D)
    o2 = o2_ref[...].astype(jnp.float32)        # (tb, D)
    label = label_ref[0].astype(jnp.float32)    # (1, tb) lane-dense

    # F.pairwise_distance (eps=1e-6): ||x1 - x2 + eps||_2 along features.
    diff = o1 - o2 + 1e-6
    sq_dist = jnp.sum(diff * diff, axis=-1, keepdims=True)   # (tb, 1)
    dist = jnp.sqrt(sq_dist)                                  # (tb, 1)
    hinge = jnp.maximum(margin - dist, 0.0)                   # (tb, 1)

    # per-row loss = (1-l)*sq + l*hinge^2 = sq + l*(hinge^2 - sq)
    delta = hinge * hinge - sq_dist                           # (tb, 1)

    # Mask batch-padding rows.
    row_id = lax.broadcasted_iota(jnp.int32, (tb, 1), 0) + i * tb
    valid = (row_id < batch).astype(jnp.float32)              # (tb, 1)

    # (1,tb) @ (tb,1) contraction keeps the label vector lane-resident.
    label_term = jnp.dot(label, delta * valid,
                         preferred_element_type=jnp.float32)[0, 0]
    tile_sum = jnp.sum(sq_dist * valid) + label_term

    # Lane-dense partial-sum output (unmasked 128-lane store).
    out_ref[...] = jnp.full((1, 1, 128), tile_sum, dtype=jnp.float32)


def contrastive_loss(output1, output2, label, margin=2.0):
    """Pallas TPU implementation of ContrastiveLoss.forward.

    output1, output2: (B, D) float arrays
    label:            (B,)  float array (0 = similar pair, 1 = dissimilar)
    returns: scalar float32 loss
    """
    B, D = output1.shape

    # Tile rows: multiple of 8, ~<=1 MiB per input block so that
    # 2 inputs x 2 pipeline buffers stay well inside scoped VMEM on all chips.
    tb = max(8, min(1024, (1 << 20) // (D * 4)))
    tb -= tb % 8
    b_pad8 = ((B + 7) // 8) * 8
    tb = min(tb, b_pad8)

    n_tiles = pl.cdiv(B, tb)
    b_pad = n_tiles * tb
    pad = b_pad - B

    o1 = jnp.pad(output1, ((0, pad), (0, 0))) if pad else output1
    o2 = jnp.pad(output2, ((0, pad), (0, 0))) if pad else output2
    lab = label.astype(jnp.float32).reshape(-1)
    if pad:
        lab = jnp.pad(lab, (0, pad))
    lab = lab.reshape(n_tiles, 1, tb)   # lane-dense label tiles

    itemsize = jnp.dtype(output1.dtype).itemsize
    partials = pl.pallas_call(
        partial(_contrastive_loss_kernel,
                margin=float(margin), batch=B, tb=tb),
        out_shape=jax.ShapeDtypeStruct((n_tiles, 1, 128), jnp.float32),
        grid=(n_tiles,),
        in_specs=[
            pl.BlockSpec((tb, D), lambda i: (i, 0)),
            pl.BlockSpec((tb, D), lambda i: (i, 0)),
            pl.BlockSpec((1, 1, tb), lambda i: (i, 0, 0)),
        ],
        out_specs=pl.BlockSpec((1, 1, 128), lambda i: (i, 0, 0)),
        compiler_params=pltpu.CompilerParams(
            dimension_semantics=("parallel",)),
        cost_estimate=pl.CostEstimate(
            flops=4 * b_pad * D,
            transcendentals=b_pad,
            bytes_accessed=2 * b_pad * D * itemsize + 4 * b_pad),
    )(o1, o2, lab)

    return jnp.sum(partials[:, 0, 0]) / B


def _reference_loss(output1, output2, label, margin=2.0):
    # Pure-JAX reference mirroring the PyTorch semantics.
    d = jnp.sqrt(jnp.sum((output1 - output2 + 1e-6) ** 2, axis=-1))
    per = (1.0 - label) * d ** 2 + label * jnp.maximum(margin - d, 0.0) ** 2
    return jnp.mean(per)


if __name__ == "__main__":
    key = jax.random.PRNGKey(0)
    k1, k2, k3 = jax.random.split(key, 3)

    B, D = 8, 128  # small embedding batch consistent with a siamese net output
    output1 = jax.random.normal(k1, (B, D), dtype=jnp.float32)
    output2 = jax.random.normal(k2, (B, D), dtype=jnp.float32)
    label = jax.random.bernoulli(k3, 0.5, (B,)).astype(jnp.float32)

    loss = contrastive_loss(output1, output2, label, margin=2.0)
    loss = jax.block_until_ready(loss)

    ref = _reference_loss(output1, output2, label, margin=2.0)
    assert jnp.allclose(loss, ref, rtol=1e-5, atol=1e-5), (loss, ref)

    print("KERNEL_OK")
</pallas_src>

<mosaic_0001>
module attributes {stable_mosaic.version = 11 : i64} {
  func.func @_contrastive_loss_kernel(%arg0: i32, %arg1: memref<8x128xf32, #tpu.memory_space<vmem>>, %arg2: memref<8x128xf32, #tpu.memory_space<vmem>>, %arg3: memref<1x1x8xf32, #tpu.memory_space<vmem>>, %arg4: memref<1x1x128xf32, #tpu.memory_space<vmem>>) attributes {dimension_semantics = [#tpu.dimension_semantics<parallel>], iteration_bounds = array<i64: 1>, scalar_prefetch = 0 : i64, scratch_operands = 0 : i64, tpu.core_type = #tpu.core_type<tc>, window_params = [{transform_indices = @transform_0, window_bounds = array<i64: 8, 128>}, {transform_indices = @transform_1, window_bounds = array<i64: 8, 128>}, {transform_indices = @transform_2, window_bounds = array<i64: 1, 1, 8>}, {transform_indices = @transform_3, window_bounds = array<i64: 1, 1, 128>}]} {
    %c0 = arith.constant 0 : index
    %c0_0 = arith.constant 0 : index
    %0 = vector.load %arg1[%c0, %c0_0] : memref<8x128xf32, #tpu.memory_space<vmem>>, vector<8x128xf32>
    %c0_1 = arith.constant 0 : index
    %c0_2 = arith.constant 0 : index
    %1 = vector.load %arg2[%c0_1, %c0_2] : memref<8x128xf32, #tpu.memory_space<vmem>>, vector<8x128xf32>
    %c0_3 = arith.constant 0 : index
    %c0_4 = arith.constant 0 : index
    %c0_5 = arith.constant 0 : index
    %2 = vector.load %arg3[%c0_3, %c0_4, %c0_5] : memref<1x1x8xf32, #tpu.memory_space<vmem>>, vector<1x1x8xf32>
    %3 = vector.shape_cast %2 : vector<1x1x8xf32> to vector<1x8xf32>
    %4 = arith.subf %0, %1 : vector<8x128xf32>
    %cst = arith.constant 9.99999997E-7 : f32
    %5 = vector.broadcast %cst : f32 to vector<8x128xf32>
    %6 = arith.addf %4, %5 : vector<8x128xf32>
    %7 = arith.mulf %6, %6 : vector<8x128xf32>
    %cst_6 = arith.constant dense<0.000000e+00> : vector<8xf32>
    %8 = vector.multi_reduction <add>, %7, %cst_6 [1] : vector<8x128xf32> to vector<8xf32>
    %9 = vector.shape_cast %8 : vector<8xf32> to vector<8x1xf32>
    %10 = math.sqrt %9 : vector<8x1xf32>
    %cst_7 = arith.constant 2.000000e+00 : f32
    %11 = vector.broadcast %cst_7 : f32 to vector<8x1xf32>
    %12 = arith.subf %11, %10 : vector<8x1xf32>
    %cst_8 = arith.constant 0.000000e+00 : f32
    %13 = vector.broadcast %cst_8 : f32 to vector<8x1xf32>
    %14 = arith.maximumf %12, %13 : vector<8x1xf32>
    %15 = arith.mulf %14, %14 : vector<8x1xf32>
    %16 = arith.subf %15, %9 : vector<8x1xf32>
    %17 = tpu.iota {dimensions = array<i32: 0>} : vector<8x1xi32>
    %c8_i32 = arith.constant 8 : i32
    %18 = arith.muli %arg0, %c8_i32 : i32
    %19 = vector.broadcast %18 : i32 to vector<8x1xi32>
    %20 = arith.addi %17, %19 : vector<8x1xi32>
    %c8_i32_9 = arith.constant 8 : i32
    %21 = vector.broadcast %c8_i32_9 : i32 to vector<8x1xi32>
    %22 = arith.cmpi slt, %20, %21 : vector<8x1xi32>
    %23 = arith.extui %22 : vector<8x1xi1> to vector<8x1xi32>
    %24 = arith.sitofp %23 : vector<8x1xi32> to vector<8x1xf32>
    %25 = arith.mulf %16, %24 : vector<8x1xf32>
    %cst_10 = arith.constant dense<0.000000e+00> : vector<1x1xf32>
    %26 = tpu.matmul %3, %25, %cst_10 {dimension_numbers = #tpu.dot_dimension_numbers<[1], [0], [0], [1], [0, 0, 1, 1], [], []>} : vector<1x8xf32>, vector<8x1xf32>, vector<1x1xf32> -> vector<1x1xf32>
    %27 = vector.extract %26[0, 0] : f32 from vector<1x1xf32>
    %28 = arith.mulf %9, %24 : vector<8x1xf32>
    %29 = vector.shape_cast %28 : vector<8x1xf32> to vector<1x8x1xf32>
    %cst_11 = arith.constant dense<0.000000e+00> : vector<1xf32>
    %30 = vector.multi_reduction <add>, %29, %cst_11 [1, 2] : vector<1x8x1xf32> to vector<1xf32>
    %31 = vector.shape_cast %30 : vector<1xf32> to vector<1x1x1xf32>
    %32 = vector.extract %31[0, 0, 0] : f32 from vector<1x1x1xf32>
    %33 = arith.addf %32, %27 : f32
    %34 = vector.broadcast %33 : f32 to vector<1x1x128xf32>
    %c0_12 = arith.constant 0 : index
    %c0_13 = arith.constant 0 : index
    %c0_14 = arith.constant 0 : index
    %35 = vector.load %arg4[%c0_12, %c0_13, %c0_14] : memref<1x1x128xf32, #tpu.memory_space<vmem>>, vector<1x1x128xf32>
    tpu.vector_store %arg4[%c0_12, %c0_13, %c0_14], %34 {strides = array<i32>} : memref<1x1x128xf32, #tpu.memory_space<vmem>>, vector<1x1x128xf32>,
    return
  }
  func.func @transform_0(%arg0: i32) -> (i32, i32) {
    %c0_i32 = arith.constant 0 : i32
    %c0_i32_0 = arith.constant 0 : i32
    return %arg0, %c0_i32 : i32, i32
  }
  func.func @transform_1(%arg0: i32) -> (i32, i32) {
    %c0_i32 = arith.constant 0 : i32
    %c0_i32_0 = arith.constant 0 : i32
    return %arg0, %c0_i32 : i32, i32
  }
  func.func @transform_2(%arg0: i32) -> (i32, i32, i32) {
    %c0_i32 = arith.constant 0 : i32
    %c0_i32_0 = arith.constant 0 : i32
    %c0_i32_1 = arith.constant 0 : i32
    return %arg0, %c0_i32, %c0_i32_0 : i32, i32, i32
  }
  func.func @transform_3(%arg0: i32) -> (i32, i32, i32) {
    %c0_i32 = arith.constant 0 : i32
    %c0_i32_0 = arith.constant 0 : i32
    %c0_i32_1 = arith.constant 0 : i32
    return %arg0, %c0_i32, %c0_i32_0 : i32, i32, i32
  }
}

</mosaic_0001>

<bundles_post_ra>
// kernel: tpu_custom_call.1
= control target key start
LH: loop header
LB: loop body
LE: loop exit
PB: predicated region body
PF: predicated region fallthrough
CT: control target
= control target key end

     0   :  { %8 = vsyncpa [#allocation3], 0  ;;  %s257_s0 = inlined_call_operand.hbm [shape: f32[8,128], index: 0, kind: input, shape index: {}]   ;;  %s258_s1 = inlined_call_operand.hbm [shape: f32[8,128], index: 1, kind: input, shape index: {}]   ;;  %s259_s2 = inlined_call_operand.vmem [shape: f32[1,1,8], index: 2, kind: input, shape index: {}]   ;;  %s260_s3 = inlined_call_operand.hbm [shape: f32[1,1,128], index: 3, kind: output, shape index: {}]  }
   0x1   :  { %9 = vsyncpa [#allocation6], 0 }
   0x2   :  { %10 = vsyncpa [#allocation4], 0  ;;  %s16_s14 = sshll.u32 %s257_s0, 4  ;;  %s222_s15 = smov [#allocation2]   ;;  %s17_s14 = int_to_ptr.hbm [resolvable:$true] %s16_s14 }
   0x3   :  { %s18_s16 = sshll.u32 %s222_s15, 4  ;;  %s27_s19 = sshll.u32 %s258_s1, 4  ;;  %s19_s16 = int_to_ptr.vmem [resolvable:$true] %s18_s16  ;;  %s28_s19 = int_to_ptr.hbm [resolvable:$true] %s27_s19 }
   0x4   :  { %21 = dma.hbm_to_vmem [thread:$0]  %s17_s14, 128, %s19_s16, [#allocation3]  }
   0x5   :  { %s223_s20 = smov [#allocation5]  }
   0x6   :  { %s29_s21 = sshll.u32 %s223_s20, 4  ;;  %s30_s21 = int_to_ptr.vmem [resolvable:$true] %s29_s21 }
   0x7   :  { %32 = dma.hbm_to_vmem [thread:$0]  %s28_s19, 128, %s30_s21, [#allocation6]  }
   0x8   :  { %216 = dma.done.wait [#allocation3], 128  }
   0x9   :  { %217 = vsyncadd [#allocation3], 4294967168 }
   0xa   :  { %218 = dma.done.wait [#allocation6], 128  }
   0xb   :  { %219 = vsyncadd [#allocation6], 4294967168  ;;  %v43_v0 = vld [vmem:[#allocation2] sm:$0xff]  ;;  %v44_v1 = vld [vmem:[#allocation5] sm:$0xff]  ;;  %vm102_vm0 = vcmask 7168   ;;  %vm76_vm3 = vcmask 64512  }
   0xc   :  { %v46_v2 = vsub.f32 %v43_v0, %v44_v1  ;;  %v45_v21 = vld [vmem:[%s259_s2] sm:$0x1]  ;;  %s224_s22 = smov [#allocation7]   ;;  %s123_s2 = sshll.u32 %s260_s3, 4  ;;  %s124_s2 = int_to_ptr.hbm [resolvable:$true] %s123_s2 }
   0xd   :  { %s121_s23 = sshll.u32 %s224_s22, 4  ;;  %s122_s23 = int_to_ptr.vmem [resolvable:$true] %s121_s23 }
   0xe   :  { %v47_v3 = vadd.f32 1e-06, %v46_v2 }
  0x10   :  { %v48_v4 = vmul.f32 %v47_v3, %v47_v3 }
  0x12   :  { %49 = vadd.xlane.f32.xlu0 %v48_v4 }
  0x85   :  { %v50_v5 = vpop.xlane.xlu0 %49 }
  0x86   :  { %142 = vrsqrt.f32 %v50_v5  ;;  %v103_v6 = vsel %vm102_vm0, %v50_v5, 0.0  ;;  %vm58_vm1 = vcmp.eq.f32.partialorder %v50_v5, inf  ;;  %v61_v14 = vand.u32 2147483648, %v50_v5 }
  0x87   :  { %104 = vadd.xlane.f32.xlu0 %v103_v6  ;;  %vm60_vm2 = vcmp.eq.f32.partialorder %v50_v5, 0.0 }
  0x8c   :  { %v143_v7 = vpop.eup %142 }
  0x8d   :  { %v52_v8 = vmul.f32 %v143_v7, %v50_v5 }
  0x8f   :  { %v53_v9 = vmul.f32 %v143_v7, %v52_v8 }
  0x91   :  { %v54_v10 = vmul.f32 0.5, %v53_v9 }
  0x93   :  { %v55_v11 = vsub.f32 1.5, %v54_v10 }
  0x95   :  { %v56_v12 = vmul.f32 %v143_v7, %v55_v11 }
  0x97   :  { %v57_v13 = vmul.f32 %v56_v12, %v50_v5 }
  0x99   :  { %v59_v15 = vsel %vm58_vm1, %v50_v5, %v57_v13 }
  0x9a   :  { %v62_v16 = vsel %vm60_vm2, %v61_v14, %v59_v15 }
  0x9b   :  { %v63_v17 = vsub.f32 2.0, %v62_v16 }
  0x9d   :  { %v64_v18 = vmax.f32 %v63_v17, 0.0 }
  0x9f   :  { %v65_v19 = vmul.f32 %v64_v18, %v64_v18 }
  0xa1   :  { %v66_v20 = vsub.f32 %v65_v19, %v50_v5 }
  0xa3   :  { %95 = vmatpush.msra.mxu0 %v66_v20 }
  0xa4   :  { %134 = vmatmul.msk.f32.vlgmr.msra.gmra.mxu0 %vm76_vm3, %v45_v21 }
  0xfa   :  { %v105_v22 = vpop.xlane.xlu0 %104 }
  0xfb   :  { %v106_v23 = vrot.slane %v105_v22, 4 }
  0xfd   :  { %v107_v24 = vadd.f32 %v106_v23, %v105_v22 }
  0xff   :  { %v108_v25 = vrot.slane %v107_v24, 2 }
 0x101   :  { %v109_v26 = vadd.f32 %v108_v25, %v107_v24 }
 0x103   :  { %v110_v27 = vrot.slane %v109_v26, 1 }
 0x105   :  { %v111_v29 = vadd.f32 %v110_v27, %v109_v26 }
 0x121   :  { %v97_v28 = vpop.f32.mrf.mxu0 }
 0x122   :  { %135 = vpush %v97_v28 }
 0x123   :  { %137 = vpush %v111_v29 }
 0x153   :  { %s136_s24 = spop %135 }
 0x154   :  { %s138_s27 = spop %137 }
 0x155   :  { %s113_s28 = sadd.f32 %s138_s27, %s136_s24 }
 0x157   :  { %v114_v30 = vstv %s113_s28 }
 0x158   :  { %115 = vst [vmem:[#allocation7] sm:$0x1] %v114_v30 }
 0x159   :  { %126 = dma.vmem_to_hbm [thread:$0]  %s122_s23, 16, %s124_s2, [#allocation4]  }
 0x15a   :  { %220 = dma.done.wait [#allocation4], 16  }
 0x15b   :  { %221 = vsyncadd [#allocation4], 4294967280 }
 0x15c   :  { %131 = vsyncpa [#allocation3], 1 }
 0x15d   :  { %132 = vsyncpa [#allocation6], 1 }
 0x15e   :  { %133 = vsyncpa [#allocation4], 1 }

</bundles_post_ra>
